<compile_context>
chip_gen: v5e
topology: v5e:2x2
jax: 0.10.0
libtpu: 0.0.40
codegen_flags: <defaults>
</compile_context>

<pallas_src>
import math
import functools

import jax
import jax.numpy as jnp
from jax.experimental import pallas as pl
from jax.experimental.pallas import tpu as pltpu


# ---------------------------------------------------------------------------
# Tiling helpers
# ---------------------------------------------------------------------------
_VMEM_LIMIT = 32 * 1024 * 1024    # explicit: v5e default scoped VMEM is 16 MiB;
                                  # 32 MiB also stays inside v7x's 64 MiB/TC.
_TILE_BUDGET = 20 * 1024 * 1024   # double-buffered x/out tiles + resident weight.


def _round_up(x, m):
    return ((x + m - 1) // m) * m


def _choose_row_tile(m, k, n, *, x_bytes=2, o_bytes=2, pref=512,
                     budget=_TILE_BUDGET):
    """Row (M) tile for a full-K/full-N GEMM.

    - large tiles (up to `pref`) for HBM-roofline efficiency,
    - >=2 blocks whenever m allows, so the "parallel" grid axis can be sharded
      across both v7x TensorCores,
    - shrinks until 2x(x tile + out tile) + resident weight fits the VMEM budget.
    """
    if m <= 16:
        tm = m                                  # single full-dim block (always legal)
    else:
        tm = min(pref, _round_up((m + 1) // 2, 8))

    def working_set(t):
        return 2 * t * (k * x_bytes + n * o_bytes) + 2 * k * n + 2 * n * 4

    while tm > 8 and working_set(tm) > budget:
        tm = max(8, _round_up(tm // 2, 8))
    if working_set(max(tm, 1)) > budget:
        # TODO(synk): K-split accumulator fallback for absurdly large odim.
        raise NotImplementedError("weight too large for a VMEM-resident full-K GEMM")
    return tm


# ---------------------------------------------------------------------------
# Pallas kernels (full-K, full-N single-block GEMMs; no scratch, no pl.when)
# ---------------------------------------------------------------------------
def _gemm_bias_act_kernel(x_ref, w_ref, b_ref, o_ref, *, relu):
    """o = act(x @ w + b); one MXU pass per row tile, weight/bias VMEM-resident."""
    y = jnp.dot(x_ref[...], w_ref[...], preferred_element_type=jnp.float32)
    y = y + b_ref[...]
    if relu:
        y = jnp.maximum(y, 0.0)
    o_ref[...] = y.astype(o_ref.dtype)


def _linear_posenc_kernel(x_ref, w_ref, b_ref, pe_ref, o_ref, *, xscale):
    """o[b,t,:] = (x[b,t,:] @ w + b) * xscale + pe[t,:]."""
    y = jnp.dot(x_ref[0], w_ref[...], preferred_element_type=jnp.float32)
    o_ref[0] = ((y + b_ref[...]) * xscale + pe_ref[...]).astype(o_ref.dtype)


def gemm_bias_relu(x, w, b, *, out_dtype=jnp.bfloat16, relu=True, tm_pref=512):
    """relu(x @ w + b): x (M,K) bf16, w (K,N) bf16 resident, b (N,) f32 -> (M,N)."""
    M, K = x.shape
    Kw, N = w.shape
    assert Kw == K
    obytes = jnp.dtype(out_dtype).itemsize
    tm = _choose_row_tile(M, K, N, o_bytes=obytes, pref=tm_pref)
    grid = (pl.cdiv(M, tm),)

    kernel = functools.partial(_gemm_bias_act_kernel, relu=relu)
    flops = 2 * M * K * N
    bytes_accessed = (M * K + K * N) * 2 + M * N * obytes + N * 4

    return pl.pallas_call(
        kernel,
        out_shape=jax.ShapeDtypeStruct((M, N), out_dtype),
        grid=grid,
        in_specs=[
            # x tile; if a trace ever shows exposed DMA at tile boundaries, add
            # pipeline_mode=pl.Buffered(3) here (VMEM headroom exists on all gens).
            pl.BlockSpec((tm, K), lambda i: (i, 0)),
            pl.BlockSpec((K, N), lambda i: (0, 0)),   # constant -> fetched once
            pl.BlockSpec((1, N), lambda i: (0, 0)),   # constant -> fetched once
        ],
        out_specs=pl.BlockSpec((tm, N), lambda i: (i, 0)),
        compiler_params=pltpu.CompilerParams(
            dimension_semantics=("parallel",),
            vmem_limit_bytes=_VMEM_LIMIT,
        ),
        cost_estimate=pl.CostEstimate(flops=flops, transcendentals=0,
                                      bytes_accessed=bytes_accessed),
    )(x.astype(jnp.bfloat16), w, jnp.asarray(b, jnp.float32).reshape(1, N))


def linear_posenc(feat, w, b, pe, xscale, *, out_dtype=jnp.float32, tt_pref=512):
    """(feat @ w + b) * xscale + pe; feat (B,T,K), pe (T,N) shared across batch."""
    B, T, K = feat.shape
    Kw, N = w.shape
    assert Kw == K
    obytes = jnp.dtype(out_dtype).itemsize
    tt = _choose_row_tile(T, K, N, o_bytes=obytes, pref=tt_pref)
    grid = (B, pl.cdiv(T, tt))        # B >= 2 gives >=2 parallel blocks for v7x

    kernel = functools.partial(_linear_posenc_kernel, xscale=float(xscale))
    flops = 2 * B * T * K * N
    bytes_accessed = (B * T * K + K * N) * 2 + (B * T * N + T * N + N) * 4

    return pl.pallas_call(
        kernel,
        out_shape=jax.ShapeDtypeStruct((B, T, N), out_dtype),
        grid=grid,
        in_specs=[
            pl.BlockSpec((1, tt, K), lambda bi, t: (bi, t, 0)),
            pl.BlockSpec((K, N), lambda bi, t: (0, 0)),   # resident weight
            pl.BlockSpec((1, N), lambda bi, t: (0, 0)),   # resident bias
            pl.BlockSpec((tt, N), lambda bi, t: (t, 0)),  # pe indexed by time only
        ],
        out_specs=pl.BlockSpec((1, tt, N), lambda bi, t: (bi, t, 0)),
        compiler_params=pltpu.CompilerParams(
            dimension_semantics=("parallel", "parallel"),
            vmem_limit_bytes=_VMEM_LIMIT,
        ),
        cost_estimate=pl.CostEstimate(flops=flops, transcendentals=0,
                                      bytes_accessed=bytes_accessed),
    )(feat.astype(jnp.bfloat16), w,
      jnp.asarray(b, jnp.float32).reshape(1, N), pe.astype(jnp.float32))


# ---------------------------------------------------------------------------
# XLA glue: window gathers + positional-encoding table
# ---------------------------------------------------------------------------
def _time_im2col_s2k3(x):
    """x (B, T, F) -> (B, To, 3*F): 3 time taps, stride 2 (kh-major ordering)."""
    B, T, F = x.shape
    To = (T - 3) // 2 + 1
    cols = [x[:, kh:kh + 2 * To:2, :] for kh in range(3)]
    return jnp.concatenate(cols, axis=-1), To


def _im2col_s2k3(x):
    """x (B, H, W, C) -> (B, Ho, Wo, 9*C), tap order (kh, kw, c)."""
    B, H, W, C = x.shape
    Ho = (H - 3) // 2 + 1
    Wo = (W - 3) // 2 + 1
    cols = []
    for kh in range(3):
        for kw in range(3):
            cols.append(x[:, kh:kh + 2 * Ho:2, kw:kw + 2 * Wo:2, :])
    return jnp.concatenate(cols, axis=-1), Ho, Wo


def positional_encoding_table(length, d_model):
    # even d_model only (same restriction as the ESPnet reference in practice)
    pos = jnp.arange(length, dtype=jnp.float32)[:, None]
    div = jnp.exp(jnp.arange(0, d_model, 2, dtype=jnp.float32)
                  * (-math.log(10000.0) / d_model))
    pe = jnp.zeros((length, d_model), dtype=jnp.float32)
    pe = pe.at[:, 0::2].set(jnp.sin(pos * div))
    pe = pe.at[:, 1::2].set(jnp.cos(pos * div))
    return pe


# ---------------------------------------------------------------------------
# Parameters: torch-layout synthetic init, converted once to kernel layout
# ---------------------------------------------------------------------------
def _toeplitz_conv1_weight(w1, idim, wo):
    """Fold the freq-axis 3-tap/stride-2 conv of layer 1 into a dense
    block-Toeplitz matrix:  Wt[kh*idim + (2f+kw), f*Cout + co] = w1[co,0,kh,kw].
    conv1 then becomes one lane-dense GEMM (K=3*idim, N=wo*Cout)."""
    cout = w1.shape[0]
    wt = jnp.zeros((3, idim, wo, cout), jnp.float32)
    for kh in range(3):
        for kw in range(3):
            for f in range(wo):
                wt = wt.at[kh, 2 * f + kw, f, :].set(w1[:, 0, kh, kw])
    return wt.reshape(3 * idim, wo * cout)


def init_params(key, idim, odim):
    """Torch-layout params converted once (host side) to kernel layout.

    * conv1: block-Toeplitz (3*idim, F1*odim) bf16, bias tiled to (F1*odim,).
    * conv2/3: (kh,kw,cin)-ordered im2col weight (9*odim, odim) bf16, UNPADDED.
    * linear: PyTorch's (b,c,t,f)->(b,t,c*f) c-major flatten folded into the
      weight so the NHWC f-major flatten needs no runtime transpose.
    """
    assert odim % 2 == 0, "PositionalEncoding requires an even odim"
    f1 = (idim - 1) // 2
    f2 = (f1 - 1) // 2
    f3 = (f2 - 1) // 2

    keys = jax.random.split(key, 8)
    params = {}

    w1 = 0.1 * jax.random.normal(keys[0], (odim, 1, 3, 3), jnp.float32)
    b1 = 0.1 * jax.random.normal(keys[1], (odim,), jnp.float32)
    params["w0"] = _toeplitz_conv1_weight(w1, idim, f1).astype(jnp.bfloat16)
    params["b0"] = jnp.tile(b1, f1)

    for i in (1, 2):
        w = 0.1 * jax.random.normal(keys[2 * i], (odim, odim, 3, 3), jnp.float32)
        bb = 0.1 * jax.random.normal(keys[2 * i + 1], (odim,), jnp.float32)
        wk = jnp.transpose(w, (2, 3, 1, 0)).reshape(9 * odim, odim)   # (kh,kw,ci,co)
        params[f"w{i}"] = wk.astype(jnp.bfloat16)
        params[f"b{i}"] = bb

    lin_in = odim * f3
    wl = 0.1 * jax.random.normal(keys[6], (odim, lin_in), jnp.float32)
    bl = 0.1 * jax.random.normal(keys[7], (odim,), jnp.float32)
    wlk = jnp.transpose(wl.reshape(odim, odim, f3), (2, 1, 0))        # (f, c, out)
    params["wl"] = wlk.reshape(f3 * odim, odim).astype(jnp.bfloat16)
    params["bl"] = bl
    return params


# ---------------------------------------------------------------------------
# Forward pass
# ---------------------------------------------------------------------------
def conv2d_subsampling8(x, x_mask, params, odim):
    """x: (B, T, idim) float32, x_mask: (B, 1, T) or None.

    Intermediate activations are bf16 (MXU accumulation in f32); acceptable for
    inference, small deviation vs. a pure-f32 PyTorch reference is expected.
    """
    B, T, idim = x.shape
    F1 = (idim - 1) // 2

    # conv1: cheap time-window gather (~1.5x input bytes) + one Toeplitz GEMM
    p1, T1 = _time_im2col_s2k3(x.astype(jnp.bfloat16))
    y = gemm_bias_relu(p1.reshape(B * T1, 3 * idim), params["w0"], params["b0"])
    h = y.reshape(B, T1, F1, odim)                   # NHWC, unpadded channels

    # conv2, conv3: spatial im2col + full-K GEMM with VMEM-resident weight
    for i in (1, 2):
        patches, Ho, Wo = _im2col_s2k3(h)
        y = gemm_bias_relu(patches.reshape(B * Ho * Wo, 9 * odim),
                           params[f"w{i}"], params[f"b{i}"])
        h = y.reshape(B, Ho, Wo, odim)

    _, T3, F3, _ = h.shape
    # PyTorch's (b,c,t,f)->(b,t,c*f) transpose is folded into params["wl"];
    # a plain row-major reshape of NHWC is all that is needed here.
    feat = h.reshape(B, T3, F3 * odim)

    pe = positional_encoding_table(T3, odim)
    out = linear_posenc(feat, params["wl"], params["bl"], pe,
                        xscale=math.sqrt(odim), out_dtype=jnp.float32)

    if x_mask is None:
        return out, None
    m = x_mask[:, :, :-2:2][:, :, :-2:2][:, :, :-2:2]
    return out, m


# ---------------------------------------------------------------------------
if __name__ == "__main__":
    B, T, idim, odim = 2, 32, 16, 32
    dropout_rate = 0.1  # unused at inference (see TODO at top)

    key = jax.random.PRNGKey(0)
    kx, kp = jax.random.split(key)
    x = jax.random.normal(kx, (B, T, idim), jnp.float32)
    x_mask = jnp.ones((B, 1, T), dtype=jnp.bool_)

    params = init_params(kp, idim, odim)

    fwd = jax.jit(conv2d_subsampling8, static_argnums=(3,))
    out, out_mask = fwd(x, x_mask, params, odim)
    out = jax.block_until_ready(out)
    out_mask = jax.block_until_ready(out_mask)

    # sanity: expected shapes
    T1 = (T - 1) // 2
    T2 = (T1 - 1) // 2
    T3 = (T2 - 1) // 2
    assert out.shape == (B, T3, odim), out.shape
    assert out_mask.shape == (B, 1, T3), out_mask.shape
    assert bool(jnp.all(jnp.isfinite(out)))

    print("KERNEL_OK")
</pallas_src>

<mosaic_0001>
module attributes {stable_mosaic.version = 11 : i64} {
  func.func @_gemm_bias_act_kernel(%arg0: i32, %arg1: memref<16x48xbf16, #tpu.memory_space<vmem>>, %arg2: memref<48x224xbf16, #tpu.memory_space<vmem>>, %arg3: memref<1x224xf32, #tpu.memory_space<vmem>>, %arg4: memref<16x224xbf16, #tpu.memory_space<vmem>>) attributes {dimension_semantics = [#tpu.dimension_semantics<parallel>], iteration_bounds = array<i64: 2>, scalar_prefetch = 0 : i64, scratch_operands = 0 : i64, tpu.core_type = #tpu.core_type<tc>, window_params = [{transform_indices = @transform_0, window_bounds = array<i64: 16, 48>}, {pipeline_mode = #tpu.pipeline_mode<synchronous>, transform_indices = @transform_1, window_bounds = array<i64: 48, 224>}, {pipeline_mode = #tpu.pipeline_mode<synchronous>, transform_indices = @transform_2, window_bounds = array<i64: 1, 224>}, {transform_indices = @transform_3, window_bounds = array<i64: 16, 224>}]} {
    %c0 = arith.constant 0 : index
    %c0_0 = arith.constant 0 : index
    %0 = vector.load %arg1[%c0, %c0_0] : memref<16x48xbf16, #tpu.memory_space<vmem>>, vector<16x48xbf16>
    %c0_1 = arith.constant 0 : index
    %c0_2 = arith.constant 0 : index
    %1 = vector.load %arg2[%c0_1, %c0_2] : memref<48x224xbf16, #tpu.memory_space<vmem>>, vector<48x224xbf16>
    %cst = arith.constant dense<0.000000e+00> : vector<16x224xf32>
    %2 = tpu.matmul %0, %1, %cst {dimension_numbers = #tpu.dot_dimension_numbers<[1], [0], [0], [1], [0, 0, 1, 1], [], []>} : vector<16x48xbf16>, vector<48x224xbf16>, vector<16x224xf32> -> vector<16x224xf32>
    %c0_3 = arith.constant 0 : index
    %c0_4 = arith.constant 0 : index
    %3 = vector.load %arg3[%c0_3, %c0_4] : memref<1x224xf32, #tpu.memory_space<vmem>>, vector<1x224xf32>
    %4 = vector.broadcast %3 : vector<1x224xf32> to vector<16x224xf32>
    %5 = arith.addf %2, %4 : vector<16x224xf32>
    %cst_5 = arith.constant 0.000000e+00 : f32
    %6 = vector.broadcast %cst_5 : f32 to vector<16x224xf32>
    %7 = arith.maximumf %5, %6 : vector<16x224xf32>
    %8 = arith.truncf %7 : vector<16x224xf32> to vector<16x224xbf16>
    %c0_6 = arith.constant 0 : index
    %c0_7 = arith.constant 0 : index
    %9 = vector.load %arg4[%c0_6, %c0_7] : memref<16x224xbf16, #tpu.memory_space<vmem>>, vector<16x224xbf16>
    tpu.vector_store %arg4[%c0_6, %c0_7], %8 {strides = array<i32>} : memref<16x224xbf16, #tpu.memory_space<vmem>>, vector<16x224xbf16>,
    return
  }
  func.func @transform_0(%arg0: i32) -> (i32, i32) {
    %c0_i32 = arith.constant 0 : i32
    %c0_i32_0 = arith.constant 0 : i32
    return %arg0, %c0_i32 : i32, i32
  }
  func.func @transform_1(%arg0: i32) -> (i32, i32) {
    %c0_i32 = arith.constant 0 : i32
    %c0_i32_0 = arith.constant 0 : i32
    %c0_i32_1 = arith.constant 0 : i32
    return %c0_i32, %c0_i32_0 : i32, i32
  }
  func.func @transform_2(%arg0: i32) -> (i32, i32) {
    %c0_i32 = arith.constant 0 : i32
    %c0_i32_0 = arith.constant 0 : i32
    %c0_i32_1 = arith.constant 0 : i32
    return %c0_i32, %c0_i32_0 : i32, i32
  }
  func.func @transform_3(%arg0: i32) -> (i32, i32) {
    %c0_i32 = arith.constant 0 : i32
    %c0_i32_0 = arith.constant 0 : i32
    return %arg0, %c0_i32 : i32, i32
  }
}

module attributes {stable_mosaic.version = 11 : i64} {
  func.func @_gemm_bias_act_kernel(%arg0: i32, %arg1: memref<24x288xbf16, #tpu.memory_space<vmem>>, %arg2: memref<288x32xbf16, #tpu.memory_space<vmem>>, %arg3: memref<1x32xf32, #tpu.memory_space<vmem>>, %arg4: memref<24x32xbf16, #tpu.memory_space<vmem>>) attributes {dimension_semantics = [#tpu.dimension_semantics<parallel>], iteration_bounds = array<i64: 2>, scalar_prefetch = 0 : i64, scratch_operands = 0 : i64, tpu.core_type = #tpu.core_type<tc>, window_params = [{transform_indices = @transform_0, window_bounds = array<i64: 24, 288>}, {pipeline_mode = #tpu.pipeline_mode<synchronous>, transform_indices = @transform_1, window_bounds = array<i64: 288, 32>}, {pipeline_mode = #tpu.pipeline_mode<synchronous>, transform_indices = @transform_2, window_bounds = array<i64: 1, 32>}, {transform_indices = @transform_3, window_bounds = array<i64: 24, 32>}]} {
    %c0 = arith.constant 0 : index
    %c0_0 = arith.constant 0 : index
    %0 = vector.load %arg1[%c0, %c0_0] : memref<24x288xbf16, #tpu.memory_space<vmem>>, vector<24x288xbf16>
    %c0_1 = arith.constant 0 : index
    %c0_2 = arith.constant 0 : index
    %1 = vector.load %arg2[%c0_1, %c0_2] : memref<288x32xbf16, #tpu.memory_space<vmem>>, vector<288x32xbf16>
    %cst = arith.constant dense<0.000000e+00> : vector<24x32xf32>
    %2 = tpu.matmul %0, %1, %cst {dimension_numbers = #tpu.dot_dimension_numbers<[1], [0], [0], [1], [0, 0, 1, 1], [], []>} : vector<24x288xbf16>, vector<288x32xbf16>, vector<24x32xf32> -> vector<24x32xf32>
    %c0_3 = arith.constant 0 : index
    %c0_4 = arith.constant 0 : index
    %3 = vector.load %arg3[%c0_3, %c0_4] : memref<1x32xf32, #tpu.memory_space<vmem>>, vector<1x32xf32>
    %4 = vector.broadcast %3 : vector<1x32xf32> to vector<24x32xf32>
    %5 = arith.addf %2, %4 : vector<24x32xf32>
    %cst_5 = arith.constant 0.000000e+00 : f32
    %6 = vector.broadcast %cst_5 : f32 to vector<24x32xf32>
    %7 = arith.maximumf %5, %6 : vector<24x32xf32>
    %8 = arith.truncf %7 : vector<24x32xf32> to vector<24x32xbf16>
    %c0_6 = arith.constant 0 : index
    %c0_7 = arith.constant 0 : index
    %9 = vector.load %arg4[%c0_6, %c0_7] : memref<24x32xbf16, #tpu.memory_space<vmem>>, vector<24x32xbf16>
    tpu.vector_store %arg4[%c0_6, %c0_7], %8 {strides = array<i32>} : memref<24x32xbf16, #tpu.memory_space<vmem>>, vector<24x32xbf16>,
    return
  }
  func.func @transform_0(%arg0: i32) -> (i32, i32) {
    %c0_i32 = arith.constant 0 : i32
    %c0_i32_0 = arith.constant 0 : i32
    return %arg0, %c0_i32 : i32, i32
  }
  func.func @transform_1(%arg0: i32) -> (i32, i32) {
    %c0_i32 = arith.constant 0 : i32
    %c0_i32_0 = arith.constant 0 : i32
    %c0_i32_1 = arith.constant 0 : i32
    return %c0_i32, %c0_i32_0 : i32, i32
  }
  func.func @transform_2(%arg0: i32) -> (i32, i32) {
    %c0_i32 = arith.constant 0 : i32
    %c0_i32_0 = arith.constant 0 : i32
    %c0_i32_1 = arith.constant 0 : i32
    return %c0_i32, %c0_i32_0 : i32, i32
  }
  func.func @transform_3(%arg0: i32) -> (i32, i32) {
    %c0_i32 = arith.constant 0 : i32
    %c0_i32_0 = arith.constant 0 : i32
    return %arg0, %c0_i32 : i32, i32
  }
}

module attributes {stable_mosaic.version = 11 : i64} {
  func.func @_gemm_bias_act_kernel(%arg0: i32, %arg1: memref<6x288xbf16, #tpu.memory_space<vmem>>, %arg2: memref<288x32xbf16, #tpu.memory_space<vmem>>, %arg3: memref<1x32xf32, #tpu.memory_space<vmem>>, %arg4: memref<6x32xbf16, #tpu.memory_space<vmem>>) attributes {dimension_semantics = [#tpu.dimension_semantics<parallel>], iteration_bounds = array<i64: 1>, scalar_prefetch = 0 : i64, scratch_operands = 0 : i64, tpu.core_type = #tpu.core_type<tc>, window_params = [{transform_indices = @transform_0, window_bounds = array<i64: 6, 288>}, {pipeline_mode = #tpu.pipeline_mode<synchronous>, transform_indices = @transform_1, window_bounds = array<i64: 288, 32>}, {pipeline_mode = #tpu.pipeline_mode<synchronous>, transform_indices = @transform_2, window_bounds = array<i64: 1, 32>}, {transform_indices = @transform_3, window_bounds = array<i64: 6, 32>}]} {
    %c0 = arith.constant 0 : index
    %c0_0 = arith.constant 0 : index
    %0 = vector.load %arg1[%c0, %c0_0] : memref<6x288xbf16, #tpu.memory_space<vmem>>, vector<6x288xbf16>
    %c0_1 = arith.constant 0 : index
    %c0_2 = arith.constant 0 : index
    %1 = vector.load %arg2[%c0_1, %c0_2] : memref<288x32xbf16, #tpu.memory_space<vmem>>, vector<288x32xbf16>
    %cst = arith.constant dense<0.000000e+00> : vector<6x32xf32>
    %2 = tpu.matmul %0, %1, %cst {dimension_numbers = #tpu.dot_dimension_numbers<[1], [0], [0], [1], [0, 0, 1, 1], [], []>} : vector<6x288xbf16>, vector<288x32xbf16>, vector<6x32xf32> -> vector<6x32xf32>
    %c0_3 = arith.constant 0 : index
    %c0_4 = arith.constant 0 : index
    %3 = vector.load %arg3[%c0_3, %c0_4] : memref<1x32xf32, #tpu.memory_space<vmem>>, vector<1x32xf32>
    %4 = vector.broadcast %3 : vector<1x32xf32> to vector<6x32xf32>
    %5 = arith.addf %2, %4 : vector<6x32xf32>
    %cst_5 = arith.constant 0.000000e+00 : f32
    %6 = vector.broadcast %cst_5 : f32 to vector<6x32xf32>
    %7 = arith.maximumf %5, %6 : vector<6x32xf32>
    %8 = arith.truncf %7 : vector<6x32xf32> to vector<6x32xbf16>
    %c0_6 = arith.constant 0 : index
    %c0_7 = arith.constant 0 : index
    %9 = vector.load %arg4[%c0_6, %c0_7] : memref<6x32xbf16, #tpu.memory_space<vmem>>, vector<6x32xbf16>
    tpu.vector_store %arg4[%c0_6, %c0_7], %8 {strides = array<i32>} : memref<6x32xbf16, #tpu.memory_space<vmem>>, vector<6x32xbf16>,
    return
  }
  func.func @transform_0(%arg0: i32) -> (i32, i32) {
    %c0_i32 = arith.constant 0 : i32
    %c0_i32_0 = arith.constant 0 : i32
    return %arg0, %c0_i32 : i32, i32
  }
  func.func @transform_1(%arg0: i32) -> (i32, i32) {
    %c0_i32 = arith.constant 0 : i32
    %c0_i32_0 = arith.constant 0 : i32
    %c0_i32_1 = arith.constant 0 : i32
    return %c0_i32, %c0_i32_0 : i32, i32
  }
  func.func @transform_2(%arg0: i32) -> (i32, i32) {
    %c0_i32 = arith.constant 0 : i32
    %c0_i32_0 = arith.constant 0 : i32
    %c0_i32_1 = arith.constant 0 : i32
    return %c0_i32, %c0_i32_0 : i32, i32
  }
  func.func @transform_3(%arg0: i32) -> (i32, i32) {
    %c0_i32 = arith.constant 0 : i32
    %c0_i32_0 = arith.constant 0 : i32
    return %arg0, %c0_i32 : i32, i32
  }
}

module attributes {stable_mosaic.version = 11 : i64} {
  func.func @_linear_posenc_kernel(%arg0: i32, %arg1: i32, %arg2: memref<1x3x32xbf16, #tpu.memory_space<vmem>>, %arg3: memref<32x32xbf16, #tpu.memory_space<vmem>>, %arg4: memref<1x32xf32, #tpu.memory_space<vmem>>, %arg5: memref<3x32xf32, #tpu.memory_space<vmem>>, %arg6: memref<1x3x32xf32, #tpu.memory_space<vmem>>) attributes {dimension_semantics = [#tpu.dimension_semantics<parallel>, #tpu.dimension_semantics<parallel>], iteration_bounds = array<i64: 2, 1>, scalar_prefetch = 0 : i64, scratch_operands = 0 : i64, tpu.core_type = #tpu.core_type<tc>, window_params = [{transform_indices = @transform_0, window_bounds = array<i64: 1, 3, 32>}, {pipeline_mode = #tpu.pipeline_mode<synchronous>, transform_indices = @transform_1, window_bounds = array<i64: 32, 32>}, {pipeline_mode = #tpu.pipeline_mode<synchronous>, transform_indices = @transform_2, window_bounds = array<i64: 1, 32>}, {transform_indices = @transform_3, window_bounds = array<i64: 3, 32>}, {transform_indices = @transform_4, window_bounds = array<i64: 1, 3, 32>}]} {
    %c0 = arith.constant 0 : index
    %c0_0 = arith.constant 0 : index
    %c0_1 = arith.constant 0 : index
    %0 = vector.load %arg2[%c0, %c0_0, %c0_1] : memref<1x3x32xbf16, #tpu.memory_space<vmem>>, vector<1x3x32xbf16>
    %1 = vector.shape_cast %0 : vector<1x3x32xbf16> to vector<3x32xbf16>
    %c0_2 = arith.constant 0 : index
    %c0_3 = arith.constant 0 : index
    %2 = vector.load %arg3[%c0_2, %c0_3] : memref<32x32xbf16, #tpu.memory_space<vmem>>, vector<32x32xbf16>
    %cst = arith.constant dense<0.000000e+00> : vector<3x32xf32>
    %3 = tpu.matmul %1, %2, %cst {dimension_numbers = #tpu.dot_dimension_numbers<[1], [0], [0], [1], [0, 0, 1, 1], [], []>} : vector<3x32xbf16>, vector<32x32xbf16>, vector<3x32xf32> -> vector<3x32xf32>
    %c0_4 = arith.constant 0 : index
    %c0_5 = arith.constant 0 : index
    %4 = vector.load %arg4[%c0_4, %c0_5] : memref<1x32xf32, #tpu.memory_space<vmem>>, vector<1x32xf32>
    %5 = vector.broadcast %4 : vector<1x32xf32> to vector<3x32xf32>
    %6 = arith.addf %3, %5 : vector<3x32xf32>
    %cst_6 = arith.constant 5.65685415 : f32
    %7 = vector.broadcast %cst_6 : f32 to vector<3x32xf32>
    %8 = arith.mulf %6, %7 : vector<3x32xf32>
    %c0_7 = arith.constant 0 : index
    %c0_8 = arith.constant 0 : index
    %9 = vector.load %arg5[%c0_7, %c0_8] : memref<3x32xf32, #tpu.memory_space<vmem>>, vector<3x32xf32>
    %10 = arith.addf %8, %9 : vector<3x32xf32>
    %c0_9 = arith.constant 0 : index
    %c0_10 = arith.constant 0 : index
    %c0_11 = arith.constant 0 : index
    %11 = vector.load %arg6[%c0_9, %c0_10, %c0_11] : memref<1x3x32xf32, #tpu.memory_space<vmem>>, vector<1x3x32xf32>
    %12 = vector.shape_cast %11 : vector<1x3x32xf32> to vector<3x32xf32>
    %13 = vector.shape_cast %10 : vector<3x32xf32> to vector<1x3x32xf32>
    tpu.vector_store %arg6[%c0_9, %c0_10, %c0_11], %13 {strides = array<i32>} : memref<1x3x32xf32, #tpu.memory_space<vmem>>, vector<1x3x32xf32>,
    return
  }
  func.func @transform_0(%arg0: i32, %arg1: i32) -> (i32, i32, i32) {
    %c0_i32 = arith.constant 0 : i32
    %c0_i32_0 = arith.constant 0 : i32
    return %arg0, %arg1, %c0_i32 : i32, i32, i32
  }
  func.func @transform_1(%arg0: i32, %arg1: i32) -> (i32, i32) {
    %c0_i32 = arith.constant 0 : i32
    %c0_i32_0 = arith.constant 0 : i32
    %c0_i32_1 = arith.constant 0 : i32
    return %c0_i32, %c0_i32_0 : i32, i32
  }
  func.func @transform_2(%arg0: i32, %arg1: i32) -> (i32, i32) {
    %c0_i32 = arith.constant 0 : i32
    %c0_i32_0 = arith.constant 0 : i32
    %c0_i32_1 = arith.constant 0 : i32
    return %c0_i32, %c0_i32_0 : i32, i32
  }
  func.func @transform_3(%arg0: i32, %arg1: i32) -> (i32, i32) {
    %c0_i32 = arith.constant 0 : i32
    %c0_i32_0 = arith.constant 0 : i32
    return %arg1, %c0_i32 : i32, i32
  }
  func.func @transform_4(%arg0: i32, %arg1: i32) -> (i32, i32, i32) {
    %c0_i32 = arith.constant 0 : i32
    %c0_i32_0 = arith.constant 0 : i32
    return %arg0, %arg1, %c0_i32 : i32, i32, i32
  }
}

</mosaic_0001>

<bundles_post_ra>
// kernel: conv2d_subsampling8.4
= control target key start
LH: loop header
LB: loop body
LE: loop exit
PB: predicated region body
PF: predicated region fallthrough
CT: control target
= control target key end

     0   :  { %s413_s12 = smov 0   ;;  %s469_s0 = inlined_call_operand.vmem [shape: bf16[30,48], index: 0, kind: input, shape index: {}]   ;;  %s470_s1 = inlined_call_operand.vmem [shape: bf16[48,224], index: 1, kind: input, shape index: {}]   ;;  %s471_s2 = inlined_call_operand.vmem [shape: f32[1,224], index: 2, kind: input, shape index: {}]   ;;  %s472_s3 = inlined_call_operand.vmem [shape: bf16[30,224], index: 3, kind: output, shape index: {}]  }
   0x1 LB: > { %s327_s13 = sadd.s32 4294967295, %s391_s12   ;;  %p331_p0 = scmp.ge.s32.totalorder %s391_s12, 1  ;;  %s391_s12 = sphi %s413_s12, %s13_s12  }
   0x2   : > { %p138_p1 = scmp.lt.s32.totalorder %s391_s12, 3 }
   0x4   : > { %p139_p2 = pnand %p331_p0, %p138_p1 }
   0x5   : > { %s332_s7 = sshll.u32 (!%p139_p2), %s327_s13, 1 }
   0x6   : > { %142 = sbr.rel (%p139_p2) target bundleno = 167 (0xa7), region = 32  ;;  %p164_p3 = scmp.lt.s32.totalorder (!%p139_p2), %s332_s7, 3 }
   0xb   : > { %v359_v0 = vld [vmem:[%s470_s1 + $0x20] sm:$0xf]  ;;  %v376_v1 = vld [vmem:[%s470_s1 + $0x24] sm:$0xf0]  ;;  %v375_v2 = vld [vmem:[%s470_s1 + $0x24] sm:$0xf] }
   0xc   : > { %v360_v3 = vor.u32 %v376_v1, %v359_v0  ;;  %v361_v4 = vld [vmem:[%s470_s1 + $0x28] sm:$0xf0]  ;;  %v351_v5 = vld [vmem:[%s470_s1 + $0x10] sm:$0xf]  ;;  %v374_v6 = vld [vmem:[%s470_s1 + $0x14] sm:$0xf0] }
   0xd   : > { %v364_v7 = vor.u32 %v375_v2, %v361_v4  ;;  %v373_v8 = vld [vmem:[%s470_s1 + $0x14] sm:$0xf]  ;;  %v353_v9 = vld [vmem:[%s470_s1 + $0x18] sm:$0xf0]  ;;  %v352_v10 = vor.u32 %v374_v6, %v351_v5  ;;  %v343_v12 = vld [vmem:[%s470_s1] sm:$0xf] }
   0xe   : > { %235 = vmatpush.bf16.msra.mxu0 %v360_v3  ;;  %v356_v11 = vor.u32 %v373_v8, %v353_v9  ;;  %v372_v13 = vld [vmem:[%s470_s1 + $0x4] sm:$0xf0]  ;;  %v371_v14 = vld [vmem:[%s470_s1 + $0x4] sm:$0xf]  ;;  %v345_v15 = vld [vmem:[%s470_s1 + $0x8] sm:$0xf0] }
   0xf   : > { %249 = vmatpush.bf16.msra.mxu1 %v364_v7  ;;  %v344_v16 = vor.u32 %v372_v13, %v343_v12  ;;  %s474_s7 = smov (!%p164_p3, %s332_s7), 3  ;;  %v348_v17 = vor.u32 %v371_v14, %v345_v15  ;;  %vm226_vm0 = vcmask 392192   ;;  %v185_v19 = vld [vmem:[%s471_s2] sm:$0x3]  ;;  %vm264_vm1 = vcmask 1043456  }
  0x10   : > { %s333_s14 = sshll.u32 %s474_s7, 2  ;;  %v187_v20 = vperm.slane %v185_v19, 0  ;;  %v188_v21 = vperm.slane %v185_v19, 1  ;;  %s369_s19 = sshll.u32 %s474_s7, 3  ;;  %vm265_vm2 = vcmask 785412  }
  0x11   : > { %s167_s17 = scalar_lea.vmem %s469_s0, %s333_s14  ;;  %s174_s22 = scalar_lea.vmem %s472_s3, %s369_s19  ;;  %vm266_vm3 = vmor %vm265_vm2, %vm264_vm1 }
  0x12   : > { %236 = vmatpush.bf16.msra.mxu0 %v352_v10  ;;  %v370_v18 = vld [vmem:[%s167_s17] sm:$0xff] }
  0x13   : > { %250 = vmatpush.bf16.msra.mxu1 %v356_v11 }
  0x16   : > { %237 = vmatpush.bf16.msra.mxu0 %v344_v16 }
  0x17   : > { %251 = vmatpush.bf16.msra.mxu1 %v348_v17 }
  0x19   : > { %365 = vmatmul.msk.bf16.vlgmr.msra.gmra.mxu0 %vm226_vm0, %v370_v18 }
  0x1a   : > { %366 = vmatmul.msk.bf16.vlgmr.msra.gmra.mxu1 %vm226_vm0, %v370_v18 }
  0x96   : > { %v239_v22 = vpop.f32.mrf.mxu0 }
  0x97   : > { %v240_v23 = vadd.f32 %v239_v22, %v187_v20  ;;  %v253_v24 = vpop.f32.mrf.mxu1 }
  0x98   : > { %v254_v25 = vadd.f32 %v253_v24, %v188_v21 }
  0x99   : > { %v258_v26 = vmax.f32 %v240_v23, 0.0 }
  0x9a   : > { %v259_v27 = vmax.f32 %v254_v25, 0.0 }
  0x9c   : > { %v262_v28 = vpack.c.bf16 %v259_v27, %v258_v26 }
  0x9e   : > { %267 = vst.msk [vmem:[%s174_s22] sm:$0xff] %vm266_vm3, %v262_v28  ;;  %v241_v29 = vpop.f32.mrf.mxu0 }
  0x9f   : > { %v242_v30 = vadd.f32 %v241_v29, %v187_v20  ;;  %v255_v31 = vpop.f32.mrf.mxu1 }
  0xa0   : > { %v256_v32 = vadd.f32 %v255_v31, %v188_v21 }
  0xa1   : > { %v260_v33 = vmax.f32 %v242_v30, 0.0 }
  0xa2   : > { %v261_v34 = vmax.f32 %v256_v32, 0.0 }
  0xa4   : > { %v263_v35 = vpack.c.bf16 %v261_v34, %v260_v33 }
  0xa6   : > { %268 = vst.msk [vmem:[%s174_s22 + $0x8] sm:$0xff] %vm266_vm3, %v263_v35 }
  0xa7 PF: > { %s13_s12 = sadd.s32 1, %s391_s12  }
  0xa8   : > { %p10_p4 = scmp.ge.s32.totalorder %s13_s12, 4  }
  0xaa   :  { %12 = sbr.rel (!%p10_p4) target bundleno = 1 (0x1), region = 62 }

// kernel: conv2d_subsampling8.5
= control target key start
LH: loop header
LB: loop body
LE: loop exit
PB: predicated region body
PF: predicated region fallthrough
CT: control target
= control target key end

     0   :  { %s646_s12 = smov 0   ;;  %s739_s0 = inlined_call_operand.vmem [shape: bf16[42,288], index: 0, kind: input, shape index: {}]   ;;  %s740_s1 = inlined_call_operand.vmem [shape: bf16[288,32], index: 1, kind: input, shape index: {}]   ;;  %s741_s2 = inlined_call_operand.vmem [shape: f32[1,32], index: 2, kind: input, shape index: {}]   ;;  %s742_s3 = inlined_call_operand.vmem [shape: bf16[42,32], index: 3, kind: output, shape index: {}]  }
   0x1 LB: > { %s484_s13 = sadd.s32 4294967295, %s624_s12   ;;  %p488_p0 = scmp.ge.s32.totalorder %s624_s12, 1  ;;  %s624_s12 = sphi %s646_s12, %s13_s12  }
   0x2   : > { %p139_p1 = scmp.lt.s32.totalorder %s624_s12, 3 }
   0x4   : > { %p140_p2 = pnand %p488_p0, %p139_p1 }
   0x5   : > { %s164_s18 = smul.u32 (!%p140_p2), 3, %s484_s13 }
   0x6   : > { %143 = sbr.rel (%p140_p2) target bundleno = 195 (0xc3), region = 32 }
   0x7   : > { %p165_p3 = scmp.lt.s32.totalorder (!%p140_p2), %s164_s18, 5 }
   0xb   : > { %v589_v0 = vld [vmem:[%s740_s1 + $0x38] sm:$0xff]  ;;  %v588_v2 = vld [vmem:[%s740_s1 + $0x30] sm:$0xff]  ;;  %v599_v3 = vld [vmem:[%s740_s1 + $0x88] sm:$0xff]  ;;  %s744_s18 = smov (!%p165_p3, %s164_s18), 5  ;;  %vm357_vm0 = vcmask 261120   ;;  %vm424_vm1 = vcmask 257024  }
   0xc   : > { %v597_v1 = vld [vmem:[%s740_s1 + $0x78] sm:$0xff]  ;;  %364 = vmatpush.bf16.msra.mxu0 %v589_v0  ;;  %600 = vmatpush.bf16.msra.mxu3 %v589_v0  ;;  %v596_v4 = vld [vmem:[%s740_s1 + $0x70] sm:$0xff]  ;;  %v598_v5 = vld [vmem:[%s740_s1 + $0x80] sm:$0xff]  ;;  %s608_s29 = smul.u32 12, %s744_s18  ;;  %s490_s5 = sshll.u32 %s744_s18, 2 }
   0xd   : > { %382 = vmatpush.bf16.msra.mxu1 %v597_v1  ;;  %406 = vmatpush.bf16.msra.mxu2 %v599_v3  ;;  %v587_v6 = vld [vmem:[%s740_s1 + $0x28] sm:$0xff]  ;;  %v586_v10 = vld [vmem:[%s740_s1 + $0x20] sm:$0xff]  ;;  %v585_v13 = vld [vmem:[%s740_s1 + $0x18] sm:$0xff]  ;;  %s175_s8 = scalar_lea.vmem %s742_s3, %s490_s5 }
   0xe   : > { %v595_v7 = vld [vmem:[%s740_s1 + $0x68] sm:$0xff]  ;;  %s684_s7 = scalar_lea.vmem %s739_s0, %s608_s29  ;;  %v594_v12 = vld [vmem:[%s740_s1 + $0x60] sm:$0xff]  ;;  %v593_v14 = vld [vmem:[%s740_s1 + $0x58] sm:$0xff] }
   0xf   : > { %v501_v8 = vld [vmem:[%s684_s7 + $0x8] sm:$0xf]  ;;  %v581_v9 = vld [vmem:[%s684_s7 + $0x10] sm:$0xf0]  ;;  %v183_v15 = vld [vmem:[%s684_s7 + $0x20] sm:$0xf] }
  0x10   : > { %365 = vmatpush.bf16.msra.mxu0 %v588_v2  ;;  %601 = vmatpush.bf16.msra.mxu3 %v588_v2  ;;  %v502_v11 = vor.u32 %v581_v9, %v501_v8  ;;  %v584_v16 = vld [vmem:[%s740_s1 + $0x10] sm:$0xff]  ;;  %v238_v18 = vunpack.c.l.b16 %v183_v15  ;;  %v583_v19 = vld [vmem:[%s740_s1 + $0x8] sm:$0xff]  ;;  %v182_v20 = vld [vmem:[%s684_s7 + $0x18] sm:$0xff] }
  0x11   : > { %383 = vmatpush.bf16.msra.mxu1 %v596_v4  ;;  %407 = vmatpush.bf16.msra.mxu2 %v598_v5  ;;  %v592_v17 = vld [vmem:[%s740_s1 + $0x50] sm:$0xff]  ;;  %v591_v21 = vld [vmem:[%s740_s1 + $0x48] sm:$0xff]  ;;  %v236_v23 = vunpack.c.l.b16 %v182_v20  ;;  %v582_v24 = vld [vmem:[%s740_s1] sm:$0xff]  ;;  %v237_v33 = vunpack.c.h.b16 %v182_v20 }
  0x12   : > { %v244_v22 = vpack.c.b16 %v238_v18, %v238_v18  ;;  %v493_v25 = vld [vmem:[%s684_s7] sm:$0xf]  ;;  %v580_v26 = vld [vmem:[%s684_s7 + $0x8] sm:$0xf0]  ;;  %v579_v28 = vld [vmem:[%s684_s7 + $0x4] sm:$0xf] }
  0x13   : > { %v590_v27 = vld [vmem:[%s740_s1 + $0x40] sm:$0xff]  ;;  %v495_v29 = vld [vmem:[%s684_s7 + $0xc] sm:$0xf0]  ;;  %v494_v30 = vor.u32 %v580_v26, %v493_v25  ;;  %v242_v31 = vpack.c.b16 %v236_v23, %v236_v23  ;;  %v243_v34 = vpack.c.b16 %v237_v33, %v237_v33 }
  0x14   : > { %366 = vmatpush.bf16.msra.mxu0 %v587_v6  ;;  %602 = vmatpush.bf16.msra.mxu3 %v587_v6  ;;  %v498_v32 = vor.u32 %v579_v28, %v495_v29  ;;  %v617_v37 = vld [vmem:[%s741_s2] ss:$0 sm:$0xff] }
  0x15   : > { %384 = vmatpush.bf16.msra.mxu1 %v595_v7  ;;  %575 = vmatmul.msk.bf16.vlgmr.msra.gmra.mxu2 %vm357_vm0, %v502_v11 }
  0x18   : > { %367 = vmatpush.bf16.msra.mxu0 %v586_v10  ;;  %603 = vmatpush.bf16.msra.mxu3 %v586_v10 }
  0x19   : > { %385 = vmatpush.bf16.msra.mxu1 %v594_v12 }
  0x1c   : > { %368 = vmatpush.bf16.msra.mxu0 %v585_v13  ;;  %604 = vmatpush.bf16.msra.mxu3 %v585_v13 }
  0x1d   : > { %386 = vmatpush.bf16.msra.mxu1 %v593_v14 }
  0x20   : > { %369 = vmatpush.bf16.msra.mxu0 %v584_v16  ;;  %605 = vmatpush.bf16.msra.mxu3 %v584_v16 }
  0x21   : > { %387 = vmatpush.bf16.msra.mxu1 %v592_v17 }
  0x24   : > { %370 = vmatpush.bf16.msra.mxu0 %v583_v19  ;;  %606 = vmatpush.bf16.msra.mxu3 %v583_v19 }
  0x25   : > { %388 = vmatpush.bf16.msra.mxu1 %v591_v21  ;;  %576 = vmatmul.msk.bf16.gmra.mxu2 %vm357_vm0, %v244_v22 }
  0x28   : > { %371 = vmatpush.bf16.msra.mxu0 %v582_v24  ;;  %607 = vmatpush.bf16.msra.mxu3 %v582_v24 }
  0x29   : > { %389 = vmatpush.bf16.msra.mxu1 %v590_v27 }
  0x2b   : > { %372 = vmatmul.bf16.vlgmr.msra.gmra.mxu0 %v494_v30  ;;  %377 = vmatmul.bf16.vlgmr.msra.gmra.mxu3 %v242_v31 }
  0x2c   : > { %390 = vmatmul.bf16.vlgmr.msra.gmra.mxu1 %v498_v32 }
  0x3c   : > { %395 = vmatmul.bf16.gmra.mxu1 %v243_v34 }
  0x98   : > { %v409_v35 = vpop.f32.mrf.mxu2 }
  0xa0   : > { %v411_v36 = vpop.f32.mrf.mxu2 }
  0xa8   : > { %v373_v38 = vpop.f32.mrf.mxu0  ;;  %v414_v41 = vpop.f32.mrf.mxu2 }
  0xa9   : > { %v374_v39 = vadd.f32 %v617_v37, %v373_v38  ;;  %v391_v40 = vpop.f32.mrf.mxu1 }
  0xab   : > { %v392_v42 = vadd.f32 %v391_v40, %v374_v39 }
  0xad   : > { %v410_v43 = vadd.f32 %v409_v35, %v392_v42 }
  0xae   : > { %v378_v44 = vpop.f32.mrf.mxu3 }
  0xaf   : > { %v418_v45 = vmax.f32 %v410_v43, 0.0  ;;  %v379_v53 = vadd.f32 %v617_v37, %v378_v44 }
  0xb0   : > { %v375_v46 = vpop.f32.mrf.mxu0  ;;  %v416_v50 = vpop.f32.mrf.mxu2 }
  0xb1   : > { %v421_v47 = vpack.c.bf16 %v418_v45, %v418_v45  ;;  %v376_v48 = vadd.f32 %v617_v37, %v375_v46  ;;  %v393_v49 = vpop.f32.mrf.mxu1 }
  0xb3   : > { %425 = vst.msk [vmem:[%s175_s8] sm:$0xf] %vm424_vm1, %v421_v47  ;;  %v394_v51 = vadd.f32 %v393_v49, %v376_v48 }
  0xb5   : > { %v412_v52 = vadd.f32 %v411_v36, %v394_v51 }
  0xb6   : > { %v380_v54 = vpop.f32.mrf.mxu3 }
  0xb7   : > { %v419_v55 = vmax.f32 %v412_v52, 0.0 }
  0xb9   : > { %v422_v56 = vpack.c.bf16 %v419_v55, %v419_v55  ;;  %v396_v57 = vpop.f32.mrf.mxu1 }
  0xba   : > { %v397_v58 = vadd.f32 %v396_v57, %v379_v53 }
  0xbb   : > { %426 = vst.msk [vmem:[%s175_s8 + $0x4] sm:$0xf] %vm424_vm1, %v422_v56 }
  0xbc   : > { %v415_v59 = vadd.f32 %v414_v41, %v397_v58 }
  0xbe   : > { %v420_v60 = vmax.f32 %v415_v59, 0.0 }
  0xc0   : > { %v423_v61 = vpack.c.bf16 %v420_v60, %v420_v60 }
  0xc1   : > { %v398_v62 = vpop.f32.mrf.mxu1 }
  0xc2   : > { %427 = vst.msk [vmem:[%s175_s8 + $0x8] sm:$0xf] %vm424_vm1, %v423_v61 }
  0xc3 PF: > { %s13_s12 = sadd.s32 1, %s624_s12  }
  0xc4   : > { %p10_p4 = scmp.ge.s32.totalorder %s13_s12, 4  }
  0xc6   :  { %12 = sbr.rel (!%p10_p4) target bundleno = 1 (0x1), region = 62 }

// kernel: conv2d_subsampling8.6
= control target key start
LH: loop header
LB: loop body
LE: loop exit
PB: predicated region body
PF: predicated region fallthrough
CT: control target
= control target key end

     0   :  { %vm175_vm0 = vcmask 261120   ;;  %vm220_vm1 = vcmask 256000   ;;  %s404_s1 = inlined_call_operand.vmem [shape: bf16[288,32], index: 1, kind: input, shape index: {}]   ;;  %s405_s0 = inlined_call_operand.vmem [shape: bf16[6,288], index: 0, kind: input, shape index: {}]   ;;  %s406_s2 = inlined_call_operand.vmem [shape: f32[1,32], index: 2, kind: input, shape index: {}]   ;;  %s407_s3 = inlined_call_operand.vmem [shape: bf16[6,32], index: 3, kind: output, shape index: {}]  }
   0x1   :  { %v306_v0 = vld [vmem:[%s404_s1 + $0x38] sm:$0xff]  ;;  %v305_v2 = vld [vmem:[%s404_s1 + $0x30] sm:$0xff]  ;;  %v316_v4 = vld [vmem:[%s404_s1 + $0x88] sm:$0xff] }
   0x2   :  { %v314_v1 = vld [vmem:[%s404_s1 + $0x78] sm:$0xff]  ;;  %179 = vmatpush.bf16.msra.mxu0 %v306_v0  ;;  %v313_v3 = vld [vmem:[%s404_s1 + $0x70] sm:$0xff]  ;;  %211 = vmatpush.bf16.msra.mxu2 %v316_v4  ;;  %v315_v5 = vld [vmem:[%s404_s1 + $0x80] sm:$0xff] }
   0x3   :  { %192 = vmatpush.bf16.msra.mxu1 %v314_v1  ;;  %v16_v6 = vld [vmem:[%s405_s0 + $0x8] sm:$0x7]  ;;  %v303_v11 = vld [vmem:[%s404_s1 + $0x20] sm:$0xff]  ;;  %v302_v13 = vld [vmem:[%s404_s1 + $0x18] sm:$0xff] }
   0x4   :  { %v61_v7 = vunpack.c.l.b16 %v16_v6  ;;  %v304_v8 = vld [vmem:[%s404_s1 + $0x28] sm:$0xff]  ;;  %v311_v12 = vld [vmem:[%s404_s1 + $0x60] sm:$0xff]  ;;  %v310_v14 = vld [vmem:[%s404_s1 + $0x58] sm:$0xff] }
   0x5   :  { %v312_v9 = vld [vmem:[%s404_s1 + $0x68] sm:$0xff]  ;;  %v301_v15 = vld [vmem:[%s404_s1 + $0x10] sm:$0xff]  ;;  %v15_v19 = vld [vmem:[%s405_s0] sm:$0x77] }
   0x6   :  { %180 = vmatpush.bf16.msra.mxu0 %v305_v2  ;;  %v64_v10 = vpack.c.b16 %v61_v7, %v61_v7  ;;  %212 = vmatpush.bf16.msra.mxu2 %v315_v5  ;;  %v309_v16 = vld [vmem:[%s404_s1 + $0x50] sm:$0xff]  ;;  %v300_v17 = vld [vmem:[%s404_s1 + $0x8] sm:$0xff]  ;;  %v59_v20 = vunpack.c.l.b16 %v15_v19  ;;  %v60_v21 = vunpack.c.h.b16 %v15_v19  ;;  %v299_v22 = vld [vmem:[%s404_s1] sm:$0xff] }
   0x7   :  { %193 = vmatpush.bf16.msra.mxu1 %v313_v3  ;;  %v308_v18 = vld [vmem:[%s404_s1 + $0x48] sm:$0xff]  ;;  %v307_v23 = vld [vmem:[%s404_s1 + $0x40] sm:$0xff] }
   0x8   :  { %v62_v24 = vpack.c.b16 %v59_v20, %v59_v20  ;;  %v63_v25 = vpack.c.b16 %v60_v21, %v60_v21  ;;  %v317_v28 = vld [vmem:[%s406_s2] ss:$0 sm:$0xff] }
   0x9   :  { %298 = vmatmul.msk.bf16.vlgmr.msra.gmra.mxu2 %vm175_vm0, %v64_v10 }
   0xa   :  { %181 = vmatpush.bf16.msra.mxu0 %v304_v8 }
   0xb   :  { %194 = vmatpush.bf16.msra.mxu1 %v312_v9 }
   0xe   :  { %182 = vmatpush.bf16.msra.mxu0 %v303_v11 }
   0xf   :  { %195 = vmatpush.bf16.msra.mxu1 %v311_v12 }
  0x12   :  { %183 = vmatpush.bf16.msra.mxu0 %v302_v13 }
  0x13   :  { %196 = vmatpush.bf16.msra.mxu1 %v310_v14 }
  0x16   :  { %184 = vmatpush.bf16.msra.mxu0 %v301_v15 }
  0x17   :  { %197 = vmatpush.bf16.msra.mxu1 %v309_v16 }
  0x1a   :  { %185 = vmatpush.bf16.msra.mxu0 %v300_v17 }
  0x1b   :  { %198 = vmatpush.bf16.msra.mxu1 %v308_v18 }
  0x1e   :  { %186 = vmatpush.bf16.msra.mxu0 %v299_v22 }
  0x1f   :  { %199 = vmatpush.bf16.msra.mxu1 %v307_v23 }
  0x21   :  { %187 = vmatmul.bf16.vlgmr.msra.gmra.mxu0 %v62_v24 }
  0x22   :  { %200 = vmatmul.bf16.vlgmr.msra.gmra.mxu1 %v63_v25 }
  0x8c   :  { %v214_v26 = vpop.f32.mrf.mxu2 }
  0x94   :  { %v216_v27 = vpop.f32.mrf.mxu2 }
  0x9e   :  { %v188_v29 = vpop.f32.mrf.mxu0 }
  0x9f   :  { %v201_v30 = vpop.f32.mrf.mxu1  ;;  %v189_v31 = vadd.f32 %v317_v28, %v188_v29 }
  0xa1   :  { %v202_v32 = vadd.f32 %v201_v30, %v189_v31 }
  0xa3   :  { %v215_v33 = vadd.f32 %v214_v26, %v202_v32 }
  0xa5   :  { %v218_v34 = vmax.f32 %v215_v33, 0.0 }
  0xa6   :  { %v190_v35 = vpop.f32.mrf.mxu0 }
  0xa7   :  { %v203_v36 = vpop.f32.mrf.mxu1  ;;  %v219_v37 = vpack.c.bf16 %v218_v34, %v218_v34 }
  0xa9   :  { %221 = vst.msk [vmem:[%s407_s3] sm:$0x7] %vm220_vm1, %v219_v37 }

// kernel: conv2d_subsampling8.7
= control target key start
LH: loop header
LB: loop body
LE: loop exit
PB: predicated region body
PF: predicated region fallthrough
CT: control target
= control target key end

     0   :  { %s470_s15 = smov 0   ;;  %s472_s16 = smov 0   ;;  %s512_s0 = inlined_call_operand.vmem [shape: bf16[2,3,32], index: 0, kind: input, shape index: {}]   ;;  %s513_s1 = inlined_call_operand.vmem [shape: bf16[32,32], index: 1, kind: input, shape index: {}]   ;;  %s514_s2 = inlined_call_operand.vmem [shape: f32[1,32], index: 2, kind: input, shape index: {}]   ;;  %s515_s3 = inlined_call_operand.vmem [shape: f32[3,32], index: 3, kind: input, shape index: {}]   ;;  %s516_s4 = inlined_call_operand.vmem [shape: f32[2,3,32], index: 4, kind: output, shape index: {}]  }
   0x1   :  { %s474_s17 = smov 0  }
   0x2 LB: > { %s26_s18 = sadd.s32 1, %s439_s16  ;;  %p380_p0 = scmp.ge.s32.totalorder %s443_s17, 1  ;;  %s443_s17 = sphi %s474_s17, %s14_s17   ;;  %s439_s16 = sphi %s472_s16, %s518_s16   ;;  %s435_s15 = sphi %s470_s15, %s517_s15  }
   0x3   : > { %p28_p1 = scmp.ge.s32.totalorder %s26_s18, 2  ;;  %p189_p2 = scmp.lt.s32.totalorder %s443_s17, 3 }
   0x5   : > { %s520_s18 = smov (%p28_p1, %s26_s18), 0  ;;  %p190_p3 = pnand %p380_p0, %p189_p2 }
   0x6   : > { %p223_p4 = scmp.lt.s32.totalorder (!%p190_p3), %s435_s15, 1 }
   0x7   : > { %193 = sbr.rel (%p190_p3) target bundleno = 154 (0x9a), region = 36 }
   0xc   : > { %v395_v0 = vld [vmem:[%s513_s1 + $0x8] sm:$0xff]  ;;  %v394_v1 = vld [vmem:[%s513_s1] sm:$0xff]  ;;  %s522_s15 = smov (!%p223_p4, %s435_s15), 1  ;;  %vm263_vm0 = vcmask 261120   ;;  %vm283_vm1 = vcmask 256000  }
   0xd   : > { %273 = vmatpush.bf16.msra.mxu0 %v395_v0  ;;  %s381_s23 = sshll.u32 %s522_s15, 1  ;;  %v420_v3 = vld [vmem:[%s514_s2] ss:$0 sm:$0xff]  ;;  %s382_s29 = sshll.u32 %s522_s15, 2 }
   0xe   : > { %s229_s26 = scalar_lea.vmem %s512_s0, %s381_s23  ;;  %v281_v6 = vld [vmem:[%s515_s3] sm:$0x7]  ;;  %s240_s8 = scalar_lea.vmem %s516_s4, %s382_s29 }
   0xf   : > { %v242_v2 = vld [vmem:[%s229_s26] sm:$0x3] }
  0x11   : > { %274 = vmatpush.bf16.msra.mxu0 %v394_v1 }
  0x14   : > { %391 = vmatmul.msk.bf16.vlgmr.msra.gmra.mxu0 %vm263_vm0, %v242_v2 }
  0x91   : > { %v276_v4 = vpop.f32.mrf.mxu0 }
  0x92   : > { %v277_v5 = vadd.f32 %v420_v3, %v276_v4 }
  0x94   : > { %v280_v7 = vmul.f32 5.656854, %v277_v5 }
  0x96   : > { %v282_v8 = vadd.f32 %v281_v6, %v280_v7 }
  0x98   : > { %284 = vst.msk [vmem:[%s240_s8] sm:$0x7] %vm283_vm1, %v282_v8 }
  0x99   : > { %v278_v9 = vpop.f32.mrf.mxu0 }
  0x9a PF: > { %s14_s17 = sadd.s32 1, %s443_s17   ;;  %s517_s15 = smov %s439_s16 }
  0x9b   : > { %p11_p5 = scmp.ge.s32.totalorder %s14_s17, 4   ;;  %s518_s16 = smov %s520_s18 }
  0x9d   :  { %13 = sbr.rel (!%p11_p5) target bundleno = 2 (0x2), region = 69 }

</bundles_post_ra>
